<compile_context>
chip_gen: v6e
topology: v6e:2x2x1
jax: 0.10.0
libtpu: 0.0.40
codegen_flags: <defaults>
</compile_context>

<pallas_src>
import jax
import jax.numpy as jnp
from jax.experimental import pallas as pl
from jax.experimental.pallas import tpu as pltpu


def _make_fused_network_kernel(num_layers):
    """Build a kernel that runs the full RBF->Linear stack in one invocation.

    Ref layout (positional):
      refs[0]                  : x        [B, In0]
      per layer i (5 refs)     : ct       [In_i, C_i]   centers, pre-transposed
                                 cc       [1, C_i]      ||c||^2 per center
                                 inv_sig2 [1, C_i]      exp(-2*log_sigmas)
                                 w        [C_i, Out_i]  linear weight, pre-transposed
                                 b        [1, Out_i]    linear bias
      refs[-1]                 : o        [B, Out_last]
    """

    def kernel(*refs):
        x_ref = refs[0]
        o_ref = refs[-1]
        h = x_ref[...]                                           # [B, In0], f32
        for i in range(num_layers):
            ct_ref, cc_ref, inv2_ref, w_ref, b_ref = refs[1 + 5 * i: 1 + 5 * (i + 1)]
            # ||x - c||^2 = ||x||^2 + ||c||^2 - 2 x.c   (cross term on the MXU)
            xx = jnp.sum(h * h, axis=-1, keepdims=True)          # [B, 1]
            xc = jnp.dot(h, ct_ref[...],
                         preferred_element_type=jnp.float32)     # [B, C]
            dist2 = jnp.maximum(xx + cc_ref[...] - 2.0 * xc, 0.0)
            # gaussian basis: exp(-(sqrt(d2)/sigma)^2) == exp(-d2 * inv_sigma2)
            phi = jnp.exp(-dist2 * inv2_ref[...])                # [B, C]
            # Linear: phi @ W^T + b   (W stored pre-transposed as [C, Out])
            h = jnp.dot(phi, w_ref[...],
                        preferred_element_type=jnp.float32) + b_ref[...]
        o_ref[...] = h.astype(o_ref.dtype)

    return kernel


def network_forward_fused(x, params):
    """Full network forward as a single Pallas call (everything VMEM-resident)."""
    num_layers = len(params)
    B = x.shape[0]
    Out = params[-1]["weight_t"].shape[1]

    flat_inputs = [x]
    for layer in params:
        flat_inputs += [layer["centers_t"], layer["centers_sq"],
                        layer["inv_sigma2"], layer["weight_t"], layer["bias"]]

    vmem_spec = pl.BlockSpec(memory_space=pltpu.MemorySpace.VMEM)
    return pl.pallas_call(
        _make_fused_network_kernel(num_layers),
        out_shape=jax.ShapeDtypeStruct((B, Out), jnp.float32),
        in_specs=[vmem_spec] * len(flat_inputs),
        out_specs=vmem_spec,
    )(*flat_inputs)


network_forward = jax.jit(network_forward_fused)


def init_network_params(key, layer_widths, layer_centers):
    """Parameter init matching the PyTorch module's shapes, plus precomputed
    kernel-ready constants (transposed centers, ||c||^2, inv_sigma2, W^T, bias row)."""
    params = []
    for i in range(len(layer_widths) - 1):
        in_f, out_f = layer_widths[i], layer_widths[i + 1]
        c = layer_centers[i]
        key, k1, k2, k3 = jax.random.split(key, 4)
        centers = jax.random.normal(k1, (c, in_f), jnp.float32)          # [C, In]
        log_sigmas = jnp.zeros((c,), jnp.float32)
        bound = 1.0 / jnp.sqrt(jnp.float32(c))
        w = jax.random.uniform(k2, (out_f, c), jnp.float32, -bound, bound)
        b = jax.random.uniform(k3, (out_f,), jnp.float32, -bound, bound)
        params.append(dict(
            # raw parameters (for the reference path)
            centers=centers,
            log_sigmas=log_sigmas,
            # precomputed, loop-invariant kernel inputs
            centers_t=jnp.asarray(centers.T, jnp.float32),               # [In, C]
            centers_sq=jnp.sum(centers * centers, axis=-1)[None, :],     # [1, C]
            inv_sigma2=jnp.exp(-2.0 * log_sigmas)[None, :],              # [1, C]
            weight_t=jnp.asarray(w.T, jnp.float32),                      # [C, Out]
            bias=b[None, :],                                             # [1, Out]
        ))
    return params


def _reference_forward(x, params):
    """Pure-JAX reference mirroring the PyTorch code literally (broadcast expand)."""
    out = x
    for layer in params:
        c = layer["centers"]                                  # [C, In]
        diff = out[:, None, :] - c[None, :, :]                # [B, C, In]
        dist = jnp.sqrt(jnp.sum(diff * diff, axis=-1))        # [B, C]
        dist = dist / jnp.exp(layer["log_sigmas"])[None, :]
        phi = jnp.exp(-(dist * dist))                         # gaussian basis
        out = phi @ layer["weight_t"] + layer["bias"]
    return out


if __name__ == "__main__":
    # Network(layer_widths=[8, 16, 4], layer_centers=[32, 24], basis_func=gaussian)
    # TODO(synk): fit()/DataLoader training loop is host-side training, not a kernel.
    layer_widths = [8, 16, 4]
    layer_centers = [32, 24]

    key = jax.random.PRNGKey(0)
    key, kx = jax.random.split(key)
    params = init_network_params(key, layer_widths, layer_centers)

    batch = 2
    x = jax.random.normal(kx, (batch, layer_widths[0]), jnp.float32)

    y = network_forward(x, params)
    y = jax.block_until_ready(y)

    y_ref = _reference_forward(x, params)
    assert y.shape == (batch, layer_widths[-1]), y.shape
    assert jnp.allclose(y, y_ref, atol=1e-4, rtol=1e-4), (y, y_ref)

    print("KERNEL_OK")
</pallas_src>

<mosaic_0001>
module attributes {stable_mosaic.version = 11 : i64} {
  func.func @kernel(%arg0: memref<2x8xf32, #tpu.memory_space<vmem>>, %arg1: memref<8x32xf32, #tpu.memory_space<vmem>>, %arg2: memref<1x32xf32, #tpu.memory_space<vmem>>, %arg3: memref<1x32xf32, #tpu.memory_space<vmem>>, %arg4: memref<32x16xf32, #tpu.memory_space<vmem>>, %arg5: memref<1x16xf32, #tpu.memory_space<vmem>>, %arg6: memref<16x24xf32, #tpu.memory_space<vmem>>, %arg7: memref<1x24xf32, #tpu.memory_space<vmem>>, %arg8: memref<1x24xf32, #tpu.memory_space<vmem>>, %arg9: memref<24x4xf32, #tpu.memory_space<vmem>>, %arg10: memref<1x4xf32, #tpu.memory_space<vmem>>, %arg11: memref<2x4xf32, #tpu.memory_space<vmem>>) attributes {dimension_semantics = [], scalar_prefetch = 0 : i64, scratch_operands = 0 : i64, tpu.core_type = #tpu.core_type<tc>} {
    %c0 = arith.constant 0 : index
    %c0_0 = arith.constant 0 : index
    %0 = vector.load %arg0[%c0, %c0_0] : memref<2x8xf32, #tpu.memory_space<vmem>>, vector<2x8xf32>
    %1 = arith.mulf %0, %0 : vector<2x8xf32>
    %cst = arith.constant dense<0.000000e+00> : vector<2xf32>
    %2 = vector.multi_reduction <add>, %1, %cst [1] : vector<2x8xf32> to vector<2xf32>
    %3 = vector.shape_cast %2 : vector<2xf32> to vector<2x1xf32>
    %c0_1 = arith.constant 0 : index
    %c0_2 = arith.constant 0 : index
    %4 = vector.load %arg1[%c0_1, %c0_2] : memref<8x32xf32, #tpu.memory_space<vmem>>, vector<8x32xf32>
    %cst_3 = arith.constant dense<0.000000e+00> : vector<2x32xf32>
    %5 = tpu.matmul %0, %4, %cst_3 {dimension_numbers = #tpu.dot_dimension_numbers<[1], [0], [0], [1], [0, 0, 1, 1], [], []>} : vector<2x8xf32>, vector<8x32xf32>, vector<2x32xf32> -> vector<2x32xf32>
    %c0_4 = arith.constant 0 : index
    %c0_5 = arith.constant 0 : index
    %6 = vector.load %arg2[%c0_4, %c0_5] : memref<1x32xf32, #tpu.memory_space<vmem>>, vector<1x32xf32>
    %7 = vector.broadcast %3 : vector<2x1xf32> to vector<2x32xf32>
    %8 = vector.broadcast %6 : vector<1x32xf32> to vector<2x32xf32>
    %9 = arith.addf %7, %8 : vector<2x32xf32>
    %cst_6 = arith.constant 2.000000e+00 : f32
    %10 = vector.broadcast %cst_6 : f32 to vector<2x32xf32>
    %11 = arith.mulf %10, %5 : vector<2x32xf32>
    %12 = arith.subf %9, %11 : vector<2x32xf32>
    %cst_7 = arith.constant 0.000000e+00 : f32
    %13 = vector.broadcast %cst_7 : f32 to vector<2x32xf32>
    %14 = arith.maximumf %12, %13 : vector<2x32xf32>
    %cst_8 = arith.constant 0.000000e+00 : f32
    %15 = vector.broadcast %cst_8 : f32 to vector<2x32xf32>
    %16 = arith.subf %15, %14 : vector<2x32xf32>
    %c0_9 = arith.constant 0 : index
    %c0_10 = arith.constant 0 : index
    %17 = vector.load %arg3[%c0_9, %c0_10] : memref<1x32xf32, #tpu.memory_space<vmem>>, vector<1x32xf32>
    %18 = vector.broadcast %17 : vector<1x32xf32> to vector<2x32xf32>
    %19 = arith.mulf %16, %18 : vector<2x32xf32>
    %20 = math.exp %19 : vector<2x32xf32>
    %c0_11 = arith.constant 0 : index
    %c0_12 = arith.constant 0 : index
    %21 = vector.load %arg4[%c0_11, %c0_12] : memref<32x16xf32, #tpu.memory_space<vmem>>, vector<32x16xf32>
    %cst_13 = arith.constant dense<0.000000e+00> : vector<2x16xf32>
    %22 = tpu.matmul %20, %21, %cst_13 {dimension_numbers = #tpu.dot_dimension_numbers<[1], [0], [0], [1], [0, 0, 1, 1], [], []>} : vector<2x32xf32>, vector<32x16xf32>, vector<2x16xf32> -> vector<2x16xf32>
    %c0_14 = arith.constant 0 : index
    %c0_15 = arith.constant 0 : index
    %23 = vector.load %arg5[%c0_14, %c0_15] : memref<1x16xf32, #tpu.memory_space<vmem>>, vector<1x16xf32>
    %24 = vector.broadcast %23 : vector<1x16xf32> to vector<2x16xf32>
    %25 = arith.addf %22, %24 : vector<2x16xf32>
    %26 = arith.mulf %25, %25 : vector<2x16xf32>
    %cst_16 = arith.constant dense<0.000000e+00> : vector<2xf32>
    %27 = vector.multi_reduction <add>, %26, %cst_16 [1] : vector<2x16xf32> to vector<2xf32>
    %28 = vector.shape_cast %27 : vector<2xf32> to vector<2x1xf32>
    %c0_17 = arith.constant 0 : index
    %c0_18 = arith.constant 0 : index
    %29 = vector.load %arg6[%c0_17, %c0_18] : memref<16x24xf32, #tpu.memory_space<vmem>>, vector<16x24xf32>
    %cst_19 = arith.constant dense<0.000000e+00> : vector<2x24xf32>
    %30 = tpu.matmul %25, %29, %cst_19 {dimension_numbers = #tpu.dot_dimension_numbers<[1], [0], [0], [1], [0, 0, 1, 1], [], []>} : vector<2x16xf32>, vector<16x24xf32>, vector<2x24xf32> -> vector<2x24xf32>
    %c0_20 = arith.constant 0 : index
    %c0_21 = arith.constant 0 : index
    %31 = vector.load %arg7[%c0_20, %c0_21] : memref<1x24xf32, #tpu.memory_space<vmem>>, vector<1x24xf32>
    %32 = vector.broadcast %28 : vector<2x1xf32> to vector<2x24xf32>
    %33 = vector.broadcast %31 : vector<1x24xf32> to vector<2x24xf32>
    %34 = arith.addf %32, %33 : vector<2x24xf32>
    %cst_22 = arith.constant 2.000000e+00 : f32
    %35 = vector.broadcast %cst_22 : f32 to vector<2x24xf32>
    %36 = arith.mulf %35, %30 : vector<2x24xf32>
    %37 = arith.subf %34, %36 : vector<2x24xf32>
    %cst_23 = arith.constant 0.000000e+00 : f32
    %38 = vector.broadcast %cst_23 : f32 to vector<2x24xf32>
    %39 = arith.maximumf %37, %38 : vector<2x24xf32>
    %cst_24 = arith.constant 0.000000e+00 : f32
    %40 = vector.broadcast %cst_24 : f32 to vector<2x24xf32>
    %41 = arith.subf %40, %39 : vector<2x24xf32>
    %c0_25 = arith.constant 0 : index
    %c0_26 = arith.constant 0 : index
    %42 = vector.load %arg8[%c0_25, %c0_26] : memref<1x24xf32, #tpu.memory_space<vmem>>, vector<1x24xf32>
    %43 = vector.broadcast %42 : vector<1x24xf32> to vector<2x24xf32>
    %44 = arith.mulf %41, %43 : vector<2x24xf32>
    %45 = math.exp %44 : vector<2x24xf32>
    %c0_27 = arith.constant 0 : index
    %c0_28 = arith.constant 0 : index
    %46 = vector.load %arg9[%c0_27, %c0_28] : memref<24x4xf32, #tpu.memory_space<vmem>>, vector<24x4xf32>
    %cst_29 = arith.constant dense<0.000000e+00> : vector<2x4xf32>
    %47 = tpu.matmul %45, %46, %cst_29 {dimension_numbers = #tpu.dot_dimension_numbers<[1], [0], [0], [1], [0, 0, 1, 1], [], []>} : vector<2x24xf32>, vector<24x4xf32>, vector<2x4xf32> -> vector<2x4xf32>
    %c0_30 = arith.constant 0 : index
    %c0_31 = arith.constant 0 : index
    %48 = vector.load %arg10[%c0_30, %c0_31] : memref<1x4xf32, #tpu.memory_space<vmem>>, vector<1x4xf32>
    %49 = vector.broadcast %48 : vector<1x4xf32> to vector<2x4xf32>
    %50 = arith.addf %47, %49 : vector<2x4xf32>
    %c0_32 = arith.constant 0 : index
    %c0_33 = arith.constant 0 : index
    %51 = vector.load %arg11[%c0_32, %c0_33] : memref<2x4xf32, #tpu.memory_space<vmem>>, vector<2x4xf32>
    tpu.vector_store %arg11[%c0_32, %c0_33], %50 {strides = array<i32>} : memref<2x4xf32, #tpu.memory_space<vmem>>, vector<2x4xf32>,
    return
  }
}

</mosaic_0001>

<bundles_post_ra>
// kernel: network_forward_fused.1
= control target key start
LH: loop header
LB: loop body
LE: loop exit
PB: predicated region body
PF: predicated region fallthrough
CT: control target
= control target key end

     0   :  { %vm46_vm0 = vcmask 64512   ;;  %v515_v2 = vmov 0.0   ;;  %vm516_vm1 = vmmov 0   ;;  %vm41_vm2 = vcmask 58368   ;;  %s650_s0 = inlined_call_operand.vmem [shape: f32[2,8], index: 0, kind: input, shape index: {}]   ;;  %s651_s1 = inlined_call_operand.vmem [shape: f32[8,32], index: 1, kind: input, shape index: {}]   ;;  %s652_s2 = inlined_call_operand.vmem [shape: f32[1,32], index: 2, kind: input, shape index: {}]   ;;  %s653_s3 = inlined_call_operand.vmem [shape: f32[1,32], index: 3, kind: input, shape index: {}]   ;;  %s654_s4 = inlined_call_operand.vmem [shape: f32[32,16], index: 4, kind: input, shape index: {}]   ;;  %s655_s5 = inlined_call_operand.vmem [shape: f32[1,16], index: 5, kind: input, shape index: {}]   ;;  %s656_s6 = inlined_call_operand.vmem [shape: f32[16,24], index: 6, kind: input, shape index: {}]   ;;  %s657_s7 = inlined_call_operand.vmem [shape: f32[1,24], index: 7, kind: input, shape index: {}]   ;;  %s658_s8 = inlined_call_operand.vmem [shape: f32[1,24], index: 8, kind: input, shape index: {}]   ;;  %s659_s9 = inlined_call_operand.vmem [shape: f32[24,4], index: 9, kind: input, shape index: {}]   ;;  %s660_s10 = inlined_call_operand.vmem [shape: f32[1,4], index: 10, kind: input, shape index: {}]   ;;  %s661_s11 = inlined_call_operand.hbm [shape: f32[2,4], index: 11, kind: output, shape index: {}]  }
   0x1   :  { %v45_v0 = vld [vmem:[%s651_s1] sm:$0xff]  ;;  %454 = vmatprep.subr.mxu1 %v515_v2  ;;  %456 = vmatprep.mubr.msk.f32.mxu1 %vm516_vm1, %v515_v2 }
   0x2   :  { %v39_v1 = vld [vmem:[%s650_s0] sm:$0x3] }
   0x3   :  { %v40_v3 = vmul.f32 %v39_v1, %v39_v1 }
   0x4   :  { %16 = vsyncpa [#allocation3], 0  ;;  %455 = vmatpush3.msra.mxu1 %v45_v0  ;;  %470 = vmatprep.subr.mxu0 %v515_v2  ;;  %v145_v5 = vld [vmem:[%s654_s4 + $0x18] sm:$0xff]  ;;  %v144_v6 = vld [vmem:[%s654_s4 + $0x10] sm:$0xff]  ;;  %vm153_vm3 = vcmask 261120   ;;  %vm234_vm4 = vcmask 130048  }
   0x5   :  { %457 = vmatmul.mubr.msk.f32.vlgmr.msra.gmra.mxu1 %vm46_vm0, %v39_v1  ;;  %v42_v4 = vsel %vm41_vm2, %v40_v3, 0.0  ;;  %459 = vmatprep.subr.mxu1 %v515_v2  ;;  %v143_v7 = vld [vmem:[%s654_s4 + $0x8] sm:$0xff]  ;;  %v142_v8 = vld [vmem:[%s654_s4] sm:$0xff]  ;;  %vm228_vm5 = vcmask 123904   ;;  %v332_v30 = vld [vmem:[%s659_s9 + $0x10] sm:$0xff]  ;;  %vm340_vm6 = vcmask 195584  }
   0x6   :  { %43 = vadd.xlane.f32.xlu0 %v42_v4  ;;  %467 = vmatprep.mubr.msk.f32.mxu1 %vm516_vm1, %v515_v2  ;;  %v431_v9 = vld [vmem:[%s652_s2] ss:$0 sm:$0xff]  ;;  %v233_v22 = vld [vmem:[%s656_s6 + $0x8] sm:$0xff]  ;;  %s517_s21 = smov [#allocation2]   ;;  %vm414_vm7 = vcmask 25600  }
   0x7   :  { %474 = vmatprep.mubr.msk.f32.mxu0 %vm516_vm1, %v515_v2  ;;  %460 = vmatpush3.msra.mxu1 %v145_v5  ;;  %v432_v17 = vld [vmem:[%s653_s3] ss:$0 sm:$0xff]  ;;  %v331_v31 = vld [vmem:[%s659_s9 + $0x8] sm:$0xff]  ;;  %s422_s22 = sshll.u32 %s517_s21, 4  ;;  %s423_s22 = int_to_ptr.vmem [resolvable:$true] %s422_s22 }
   0x8   :  { %461 = vmatprep.subr.mxu1 %v515_v2  ;;  %471 = vmatpush3.msra.mxu0 %v233_v22  ;;  %v232_v23 = vld [vmem:[%s656_s6] sm:$0xff]  ;;  %p498_p1 = scmp.lt.s32.totalorder %s423_s22, %s423_s22 }
   0x9   :  { %462 = vmatpush3.msra.mxu1 %v144_v6  ;;  %472 = vmatprep.subr.mxu0 %v515_v2  ;;  %v433_v24 = vld [vmem:[%s655_s5] ss:$0 sm:$0xff] }
   0xa   :  { %463 = vmatprep.subr.mxu1 %v515_v2  ;;  %473 = vmatpush3.msra.mxu0 %v232_v23  ;;  %v330_v32 = vld [vmem:[%s659_s9] sm:$0xff] }
   0xb   :  { %464 = vmatpush3.msra.mxu1 %v143_v7  ;;  %477 = vmatprep.subr.mxu0 %v515_v2  ;;  %v436_v33 = vld [vmem:[%s657_s7] ss:$0 sm:$0xff] }
   0xc   :  { %465 = vmatprep.subr.mxu1 %v515_v2  ;;  %v437_v41 = vld [vmem:[%s658_s8] ss:$0 sm:$0xff]  ;;  %s493_s8 = scalar_lea.vmem %s423_s22, 32 }
   0xd   :  { %466 = vmatpush3.msra.mxu1 %v142_v8  ;;  %v438_v46 = vld [vmem:[%s660_s10] ss:$0 sm:$0xff]  ;;  %p494_p0 = scmp.ne.s32.totalorder %s423_s22, %s493_s8  ;;  %p499_p2 = scmp.lt.s32.totalorder %s493_s8, %s493_s8 }
   0xf   :  { %p500_p3 = por %p499_p2, %p498_p1 }
  0x11   :  { %p501_p4 = pnand %p500_p3, %p494_p0 }
  0x8f   :  { %v44_v10 = vpop.xlane.xlu0 %43 }
  0x90   :  { %v127_v11 = vadd.f32 %v431_v9, %v44_v10 }
  0xc5   :  { %v116_v12 = vpop.f32.mrf.mxu1 }
  0xc6   :  { %v128_v13 = vmul.f32 2.0, %v116_v12 }
  0xc7   :  { %v458_v14 = vpop.f32.mrf.mxu1 }
  0xc8   :  { %v129_v15 = vsub.f32 %v127_v11, %v128_v13 }
  0xca   :  { %v130_v16 = vmax.f32 %v129_v15, 0.0 }
  0xcc   :  { %v131_v18 = vsub.f32 0.0, %v130_v16 }
  0xce   :  { %v139_v19 = vmul.f32 %v432_v17, %v131_v18 }
  0xd0   :  { %v140_v20 = vmul.f32 1.442695, %v139_v19 }
  0xd2   :  { %489 = vpow2.f32 %v140_v20 }
  0xdf   :  { %v490_v21 = vpop.eup %489 }
  0xe0   :  { %468 = vmatmul.mubr.msk.f32.vlgmr.msra.gmra.mxu1 %vm153_vm3, %v490_v21 }
 0x1a0   :  { %v223_v25 = vpop.f32.mrf.mxu1 }
 0x1a1   :  { %v224_v26 = vadd.f32 %v433_v24, %v223_v25 }
 0x1a2   :  { %v469_v27 = vpop.f32.mrf.mxu1 }
 0x1a3   :  { %475 = vmatmul.mubr.msk.f32.vlgmr.msra.gmra.mxu0 %vm234_vm4, %v224_v26  ;;  %v227_v28 = vmul.f32 %v224_v26, %v224_v26 }
 0x1a4   :  { %483 = vmatprep.mubr.msk.f32.mxu0 %vm516_vm1, %v515_v2  ;;  %478 = vmatpush3.msra.mxu0 %v332_v30 }
 0x1a5   :  { %v229_v29 = vsel %vm228_vm5, %v227_v28, 0.0  ;;  %479 = vmatprep.subr.mxu0 %v515_v2 }
 0x1a6   :  { %230 = vadd.xlane.f32.xlu0 %v229_v29  ;;  %480 = vmatpush3.msra.mxu0 %v331_v31 }
 0x1a7   :  { %481 = vmatprep.subr.mxu0 %v515_v2 }
 0x1a8   :  { %482 = vmatpush3.msra.mxu0 %v330_v32 }
 0x22f   :  { %v231_v34 = vpop.xlane.xlu0 %230 }
 0x230   :  { %v315_v36 = vadd.f32 %v436_v33, %v231_v34 }
 0x263   :  { %v304_v35 = vpop.f32.mrf.mxu0 }
 0x264   :  { %v316_v37 = vmul.f32 2.0, %v304_v35 }
 0x265   :  { %v476_v38 = vpop.f32.mrf.mxu0 }
 0x266   :  { %v317_v39 = vsub.f32 %v315_v36, %v316_v37 }
 0x268   :  { %v318_v40 = vmax.f32 %v317_v39, 0.0 }
 0x26a   :  { %v319_v42 = vsub.f32 0.0, %v318_v40 }
 0x26c   :  { %v327_v43 = vmul.f32 %v437_v41, %v319_v42 }
 0x26e   :  { %v328_v44 = vmul.f32 1.442695, %v327_v43 }
 0x270   :  { %491 = vpow2.f32 %v328_v44 }
 0x27d   :  { %v492_v45 = vpop.eup %491 }
 0x27e   :  { %484 = vmatmul.mubr.msk.f32.vlgmr.msra.gmra.mxu0 %vm340_vm6, %v492_v45 }
 0x33e   :  { %v410_v47 = vpop.f32.mrf.mxu0 }
 0x33f   :  { %v411_v48 = vadd.f32 %v438_v46, %v410_v47 }
 0x340   :  { %v485_v49 = vpop.f32.mrf.mxu0 }
 0x341   :  { %415 = vst.msk [vmem:[#allocation2] sm:$0x3] %vm414_vm7, %v411_v48 }
 0x342   :  { %504 = shalt.err (!%p501_p4)
}
 0x343   :  { %425 = dma.vmem_to_hbm [thread:$0]  %s423_s22, 32, %s661_s11, [#allocation3]  }
 0x344   :  { %513 = dma.done.wait [#allocation3], 32  }
 0x345   :  { %514 = vsyncadd [#allocation3], 4294967264 }
 0x346   :  { %429 = vsyncpa [#allocation3], 1 }

</bundles_post_ra>
